<compile_context>
chip_gen: v7x
topology: tpu7x:2x2x1
jax: 0.10.0
libtpu: 0.0.40
codegen_flags: <defaults>
</compile_context>

<pallas_src>
import jax
import jax.numpy as jnp
from jax.experimental import pallas as pl
from jax.experimental.pallas import tpu as pltpu


def critic_kernel(s_ref, a_ref, w1s_ref, w1a_ref, b1_ref, w2_ref, b2_ref, q_ref):
    # s_ref:  (TB, Ds) f32   state tile
    # a_ref:  (TB, Da) f32   action tile
    # w1s_ref:(Ds, H)  bf16  fc1 weight rows for the state features (resident)
    # w1a_ref:(Da, H)  bf16  fc1 weight rows for the action features (resident)
    # b1_ref: (1, H)   f32   fc1 bias (resident)
    # w2_ref: (1, H)   f32   q-head weight as a lane-dense row (resident)
    # b2_ref: (1,)     f32   q-head bias, resident in SMEM
    # q_ref:  (1, TB)  f32   lane-dense output tile (batch along lanes)
    s16 = s_ref[...].astype(jnp.bfloat16)
    a16 = a_ref[...].astype(jnp.bfloat16)
    h = jnp.dot(s16, w1s_ref[...], preferred_element_type=jnp.float32)
    h = h + jnp.dot(a16, w1a_ref[...], preferred_element_type=jnp.float32)
    h = jnp.maximum(h + b1_ref[...], 0.0)            # F.relu(fc1(cat(s, a))), f32
    # q head contracted over H -> (1, TB): output is lane-dense, so the store
    # is full-width vst instead of TB masked single-lane stores.
    q = jax.lax.dot_general(
        w2_ref[...], h,
        dimension_numbers=(((1,), (1,)), ((), ())),
        preferred_element_type=jnp.float32)
    q_ref[...] = (q + b2_ref[0]).astype(q_ref.dtype)  # self.q(x)


def _choose_tiling(B):
    """Pick (TB, num_tiles) for the batch axis.

    B <= 128: one full-array block (no padding, no ragged tail).
    B  > 128: TB is a multiple of 128 (lane-dense output requirement), grown up
    to 1024 while keeping >= 2 tiles so both v7x TensorCores get work; the last
    tile may be ragged (handled by Pallas, tail lanes dropped by the wrapper).
    """
    if B <= 128:
        return B, 1
    tb = 128
    while tb * 2 <= 1024 and pl.cdiv(B, tb * 2) >= 2:
        tb *= 2
    return tb, pl.cdiv(B, tb)


def critic_forward(state, action, params):
    state = state.astype(jnp.float32)
    action = action.astype(jnp.float32)
    B, Ds = state.shape
    _, Da = action.shape
    H = params["w1_state"].shape[1]

    TB, num_tiles = _choose_tiling(B)

    q_row = pl.pallas_call(
        critic_kernel,
        out_shape=jax.ShapeDtypeStruct((1, B), jnp.float32),
        grid=(num_tiles,),
        in_specs=[
            pl.BlockSpec((TB, Ds), lambda i: (i, 0)),            # state tile
            pl.BlockSpec((TB, Da), lambda i: (i, 0)),            # action tile
            pl.BlockSpec((Ds, H), lambda i: (0, 0)),             # W1_state (resident)
            pl.BlockSpec((Da, H), lambda i: (0, 0)),             # W1_action (resident)
            pl.BlockSpec((1, H), lambda i: (0, 0)),              # b1 (resident)
            pl.BlockSpec((1, H), lambda i: (0, 0)),              # w2 row (resident)
            pl.BlockSpec(memory_space=pltpu.MemorySpace.SMEM),   # b2 scalar
        ],
        out_specs=pl.BlockSpec((1, TB), lambda i: (0, i)),       # lane-dense q row
        compiler_params=pltpu.CompilerParams(
            dimension_semantics=("parallel",)),
    )(state, action, params["w1_state"], params["w1_action"],
      params["b1"], params["w2_row"], params["b2"])

    # (1, B) lane-dense row -> (B, 1) column, matching the torch module's output.
    return q_row.reshape(B, 1)


def init_params(key, input_dims, n_actions, fc1_dims):
    """Deterministic synthetic init (uniform, like torch Linear default range),
    stored directly in the split / transposed / bf16 layout the kernel uses."""
    d_in = input_dims + n_actions
    k1, k2, k3, k4 = jax.random.split(key, 4)
    bound1 = 1.0 / jnp.sqrt(d_in)
    bound2 = 1.0 / jnp.sqrt(fc1_dims)
    w1 = jax.random.uniform(k1, (d_in, fc1_dims), jnp.float32, -bound1, bound1)
    return {
        "w1_state": w1[:input_dims].astype(jnp.bfloat16),    # (Ds, H) bf16
        "w1_action": w1[input_dims:].astype(jnp.bfloat16),   # (Da, H) bf16
        "b1": jax.random.uniform(k2, (1, fc1_dims), jnp.float32, -bound1, bound1),
        "w2_row": jax.random.uniform(k3, (1, fc1_dims), jnp.float32, -bound2, bound2),
        "b2": jax.random.uniform(k4, (1,), jnp.float32, -bound2, bound2),
    }


if __name__ == "__main__":
    # Small shapes consistent with the module's forward:
    #   state: (batch, input_dims), action: (batch, n_actions)
    batch, input_dims, n_actions, fc1_dims = 8, 16, 4, 32

    key = jax.random.PRNGKey(0)
    k_state, k_action, k_params = jax.random.split(key, 3)

    state = jax.random.normal(k_state, (batch, input_dims), jnp.float32)
    action = jax.random.normal(k_action, (batch, n_actions), jnp.float32)
    params = init_params(k_params, input_dims, n_actions, fc1_dims)

    q = critic_forward(state, action, params)
    q = jax.block_until_ready(q)

    # Pure-JAX reference of the same forward pass, mirroring the kernel's
    # numerics (bf16 inputs/weights for fc1, f32 accumulate/epilogue):
    #   q = Linear(relu(Linear(cat([state, action], dim=1)))).
    w1_full = jnp.concatenate(
        [params["w1_state"], params["w1_action"]], axis=0).astype(jnp.float32)
    x = jnp.concatenate([state, action], axis=1).astype(jnp.bfloat16)
    x = x.astype(jnp.float32)
    ref = (jnp.maximum(x @ w1_full + params["b1"], 0.0) @ params["w2_row"].T
           + params["b2"])
    assert q.shape == (batch, 1)
    assert jnp.allclose(q, ref, atol=1e-2, rtol=1e-2)

    print("KERNEL_OK")
</pallas_src>

<mosaic_0001>
module attributes {stable_mosaic.version = 11 : i64} {
  func.func @critic_kernel(%arg0: i32, %arg1: memref<8x16xf32, #tpu.memory_space<vmem>>, %arg2: memref<8x4xf32, #tpu.memory_space<vmem>>, %arg3: memref<16x32xbf16, #tpu.memory_space<vmem>>, %arg4: memref<4x32xbf16, #tpu.memory_space<vmem>>, %arg5: memref<1x32xf32, #tpu.memory_space<vmem>>, %arg6: memref<1x32xf32, #tpu.memory_space<vmem>>, %arg7: memref<1xf32, #tpu.memory_space<smem>>, %arg8: memref<1x8xf32, #tpu.memory_space<vmem>>) attributes {dimension_semantics = [#tpu.dimension_semantics<parallel>], iteration_bounds = array<i64: 1>, scalar_prefetch = 0 : i64, scratch_operands = 0 : i64, tpu.core_type = #tpu.core_type<tc>, window_params = [{transform_indices = @transform_0, window_bounds = array<i64: 8, 16>}, {transform_indices = @transform_1, window_bounds = array<i64: 8, 4>}, {pipeline_mode = #tpu.pipeline_mode<synchronous>, transform_indices = @transform_2, window_bounds = array<i64: 16, 32>}, {pipeline_mode = #tpu.pipeline_mode<synchronous>, transform_indices = @transform_3, window_bounds = array<i64: 4, 32>}, {pipeline_mode = #tpu.pipeline_mode<synchronous>, transform_indices = @transform_4, window_bounds = array<i64: 1, 32>}, {pipeline_mode = #tpu.pipeline_mode<synchronous>, transform_indices = @transform_5, window_bounds = array<i64: 1, 32>}, {transform_indices = @transform_6, window_bounds = array<i64: 1>}, {transform_indices = @transform_7, window_bounds = array<i64: 1, 8>}]} {
    %c0 = arith.constant 0 : index
    %c0_0 = arith.constant 0 : index
    %0 = vector.load %arg1[%c0, %c0_0] : memref<8x16xf32, #tpu.memory_space<vmem>>, vector<8x16xf32>
    %1 = arith.truncf %0 : vector<8x16xf32> to vector<8x16xbf16>
    %c0_1 = arith.constant 0 : index
    %c0_2 = arith.constant 0 : index
    %2 = vector.load %arg2[%c0_1, %c0_2] : memref<8x4xf32, #tpu.memory_space<vmem>>, vector<8x4xf32>
    %3 = arith.truncf %2 : vector<8x4xf32> to vector<8x4xbf16>
    %c0_3 = arith.constant 0 : index
    %c0_4 = arith.constant 0 : index
    %4 = vector.load %arg3[%c0_3, %c0_4] : memref<16x32xbf16, #tpu.memory_space<vmem>>, vector<16x32xbf16>
    %cst = arith.constant dense<0.000000e+00> : vector<8x32xf32>
    %5 = tpu.matmul %1, %4, %cst {dimension_numbers = #tpu.dot_dimension_numbers<[1], [0], [0], [1], [0, 0, 1, 1], [], []>} : vector<8x16xbf16>, vector<16x32xbf16>, vector<8x32xf32> -> vector<8x32xf32>
    %c0_5 = arith.constant 0 : index
    %c0_6 = arith.constant 0 : index
    %6 = vector.load %arg4[%c0_5, %c0_6] : memref<4x32xbf16, #tpu.memory_space<vmem>>, vector<4x32xbf16>
    %cst_7 = arith.constant dense<0.000000e+00> : vector<8x32xf32>
    %7 = tpu.matmul %3, %6, %cst_7 {dimension_numbers = #tpu.dot_dimension_numbers<[1], [0], [0], [1], [0, 0, 1, 1], [], []>} : vector<8x4xbf16>, vector<4x32xbf16>, vector<8x32xf32> -> vector<8x32xf32>
    %8 = arith.addf %5, %7 : vector<8x32xf32>
    %c0_8 = arith.constant 0 : index
    %c0_9 = arith.constant 0 : index
    %9 = vector.load %arg5[%c0_8, %c0_9] : memref<1x32xf32, #tpu.memory_space<vmem>>, vector<1x32xf32>
    %10 = vector.broadcast %9 : vector<1x32xf32> to vector<8x32xf32>
    %11 = arith.addf %8, %10 : vector<8x32xf32>
    %cst_10 = arith.constant 0.000000e+00 : f32
    %12 = vector.broadcast %cst_10 : f32 to vector<8x32xf32>
    %13 = arith.maximumf %11, %12 : vector<8x32xf32>
    %c0_11 = arith.constant 0 : index
    %c0_12 = arith.constant 0 : index
    %14 = vector.load %arg6[%c0_11, %c0_12] : memref<1x32xf32, #tpu.memory_space<vmem>>, vector<1x32xf32>
    %cst_13 = arith.constant dense<0.000000e+00> : vector<1x8xf32>
    %15 = tpu.matmul %14, %13, %cst_13 {dimension_numbers = #tpu.dot_dimension_numbers<[1], [1], [0], [0], [0, 0, 1, 0], [], []>} : vector<1x32xf32>, vector<8x32xf32>, vector<1x8xf32> -> vector<1x8xf32>
    %c0_14 = arith.constant 0 : index
    %16 = memref.load %arg7[%c0_14] : memref<1xf32, #tpu.memory_space<smem>>
    %17 = vector.broadcast %16 : f32 to vector<1x8xf32>
    %18 = arith.addf %15, %17 : vector<1x8xf32>
    %c0_15 = arith.constant 0 : index
    %c0_16 = arith.constant 0 : index
    %19 = vector.load %arg8[%c0_15, %c0_16] : memref<1x8xf32, #tpu.memory_space<vmem>>, vector<1x8xf32>
    tpu.vector_store %arg8[%c0_15, %c0_16], %18 {strides = array<i32>} : memref<1x8xf32, #tpu.memory_space<vmem>>, vector<1x8xf32>,
    return
  }
  func.func @transform_0(%arg0: i32) -> (i32, i32) {
    %c0_i32 = arith.constant 0 : i32
    %c0_i32_0 = arith.constant 0 : i32
    return %arg0, %c0_i32 : i32, i32
  }
  func.func @transform_1(%arg0: i32) -> (i32, i32) {
    %c0_i32 = arith.constant 0 : i32
    %c0_i32_0 = arith.constant 0 : i32
    return %arg0, %c0_i32 : i32, i32
  }
  func.func @transform_2(%arg0: i32) -> (i32, i32) {
    %c0_i32 = arith.constant 0 : i32
    %c0_i32_0 = arith.constant 0 : i32
    %c0_i32_1 = arith.constant 0 : i32
    return %c0_i32, %c0_i32_0 : i32, i32
  }
  func.func @transform_3(%arg0: i32) -> (i32, i32) {
    %c0_i32 = arith.constant 0 : i32
    %c0_i32_0 = arith.constant 0 : i32
    %c0_i32_1 = arith.constant 0 : i32
    return %c0_i32, %c0_i32_0 : i32, i32
  }
  func.func @transform_4(%arg0: i32) -> (i32, i32) {
    %c0_i32 = arith.constant 0 : i32
    %c0_i32_0 = arith.constant 0 : i32
    %c0_i32_1 = arith.constant 0 : i32
    return %c0_i32, %c0_i32_0 : i32, i32
  }
  func.func @transform_5(%arg0: i32) -> (i32, i32) {
    %c0_i32 = arith.constant 0 : i32
    %c0_i32_0 = arith.constant 0 : i32
    %c0_i32_1 = arith.constant 0 : i32
    return %c0_i32, %c0_i32_0 : i32, i32
  }
  func.func @transform_6(%arg0: i32) -> i32 {
    %c0_i32 = arith.constant 0 : i32
    %c0_i32_0 = arith.constant 0 : i32
    return %c0_i32 : i32
  }
  func.func @transform_7(%arg0: i32) -> (i32, i32) {
    %c0_i32 = arith.constant 0 : i32
    %c0_i32_0 = arith.constant 0 : i32
    return %c0_i32, %arg0 : i32, i32
  }
}

</mosaic_0001>

<bundles_post_ra>
// kernel: tpu_custom_call.1
= control target key start
LH: loop header
LB: loop body
LE: loop exit
PB: predicated region body
PF: predicated region fallthrough
CT: control target
= control target key end

     0   :  { %vm40_vm0 = vcmask 1041408   ;;  %v296_v1 = vmov 0.0   ;;  %vm297_vm1 = vmmov 0   ;;  %vm36_vm2 = vcmask 31744   ;;  %s372_s0 = inlined_call_operand.vmem [shape: f32[8,16], index: 0, kind: input, shape index: {}]   ;;  %s373_s1 = inlined_call_operand.vmem [shape: f32[8,4], index: 1, kind: input, shape index: {}]   ;;  %s374_s2 = inlined_call_operand.vmem [shape: bf16[16,32], index: 2, kind: input, shape index: {}]   ;;  %s375_s3 = inlined_call_operand.vmem [shape: bf16[4,32], index: 3, kind: input, shape index: {}]   ;;  %s376_s4 = inlined_call_operand.vmem [shape: f32[1,32], index: 4, kind: input, shape index: {}]   ;;  %s377_s5 = inlined_call_operand.vmem [shape: f32[1,32], index: 5, kind: input, shape index: {}]   ;;  %s378_s6 = inlined_call_operand.<no memory space> [shape: f32[1], index: 6, kind: input, shape index: {}]   ;;  %s379_s7 = inlined_call_operand.hbm [shape: f32[1,8], index: 7, kind: output, shape index: {}]  }
   0x1   :  { %v35_v0 = vld [vmem:[%s375_s3] sm:$0x3]  ;;  %251 = vmatprep.subr.bf16.mxu0 %v296_v1  ;;  %257 = vmatprep.subr.bf16.mxu1 %v296_v1 }
   0x2   :  { %v42_v2 = vsel %vm40_vm0, %v35_v0, 0  ;;  %v271_v3 = vld [vmem:[%s374_s2] sm:$0xff]   ;;  %253 = vmatprep.mubr.msk.bf16.mxu0 %vm297_vm1, %v296_v1 }
   0x3   :  { %v31_v4 = vld [vmem:[%s373_s1] sm:$0xff]  ;;  %252 = vmatpush3.bf16.msra.mxu0 %v42_v2 }
   0x4   :  { %v32_v5 = vpack.c.bf16 %v31_v4, %v31_v4  ;;  %v29_v6 = vld [vmem:[%s372_s0] sm:$0xff] }
   0x5   :  { %13 = vsyncpa [#allocation4], 0  ;;  %258 = vmatpush3.bf16.msra.mxu1 %v271_v3  ;;  %259 = vmatprep.mubr.msk.bf16.mxu1 %vm297_vm1, %v296_v1  ;;  %v30_v7 = vpack.c.bf16 %v29_v6, %v29_v6  ;;  %vm90_vm3 = vcmask 130048   ;;  %v242_v11 = vld [vmem:[%s376_s4] ss:$0 sm:$0xff]  ;;  %vm146_vm4 = vcmask 261120   ;;  %v145_v21 = vstv %s378_s6 }
   0x6   :  { %263 = vmatprep.subr.mxu0 %v296_v1  ;;  %254 = vmatmul.mubr.msk.bf16.vlgmr.msra.gmra.mrb[0].mxu0 %vm36_vm2, %v32_v5  ;;  %v143_v20 = vld [vmem:[%s377_s5] sm:$0x1]  ;;  %s298_s4 = smov [#allocation3]   ;;  %vm223_vm5 = vcmask 57344  }
   0x7   :  { %265 = vmatprep.mubr.msk.f32.mxu0 %vm297_vm1, %v296_v1  ;;  %s231_s11 = sshll.u32 %s298_s4, 4  ;;  %s232_s11 = int_to_ptr.vmem [resolvable:$true] %s231_s11 }
   0x8   :  { %260 = vmatmul.mubr.msk.bf16.vlgmr.msra.gmra.mrb[0].mxu1 %vm90_vm3, %v30_v7  ;;  %s272_s12 = scalar_lea.vmem %s232_s11, 16  ;;  %s276_s13 = scalar_lea.vmem %s232_s11, 32 }
   0x9   :  { %p273_p0 = scmp.ne.s32.totalorder %s232_s11, %s272_s12  ;;  %p277_p1 = scmp.lt.s32.totalorder %s232_s11, %s232_s11 }
   0xa   :  { %p278_p2 = scmp.lt.s32.totalorder %s276_s13, %s272_s12 }
   0xc   :  { %p279_p3 = por %p278_p2, %p277_p1 }
   0xe   :  { %p280_p4 = pnand %p279_p3, %p273_p0 }
  0xd9   :  { %v78_v8 = vpop.f32.mrb[0].mxu0 }
  0xda   :  { %v255_v9 = vpop.f32.mrb[1].mxu0 }
  0xdb   :  { %v128_v10 = vpop.f32.mrb[0].mxu1  ;;  %v81_v13 = vpop.f32.mrb[2].mxu0 }
  0xdc   :  { %v129_v12 = vadd.f32 %v128_v10, %v78_v8  ;;  %v261_v14 = vpop.f32.mrb[1].mxu1  ;;  %v256_v15 = vpop.f32.mrb[3].mxu0 }
  0xdd   :  { %v131_v16 = vpop.f32.mrb[2].mxu1 }
  0xde   :  { %v141_v17 = vadd.f32 %v242_v11, %v129_v12  ;;  %v262_v18 = vpop.f32.mrb[3].mxu1 }
  0xe0   :  { %v142_v19 = vmax.f32 %v141_v17, 0.0 }
  0xe2   :  { %264 = vmatpush3.xpose.msk.msra.mxu0 %vm146_vm4, %v142_v19 }
  0xe5   :  { %266 = vmatmul.mubr.msk.f32.vlgmr.msra.gmra.mrb[4].mxu0 %vm146_vm4, %v143_v20 }
 0x1b8   :  { %v219_v22 = vpop.f32.mrb[4].mxu0 }
 0x1b9   :  { %v220_v23 = vadd.f32 %v219_v22, %v145_v21  ;;  %v267_v24 = vpop.f32.mrb[5].mxu0 }
 0x1bb   :  { %224 = vst.msk [vmem:[#allocation3] sm:$0x1] %vm223_vm5, %v220_v23 }
 0x1bc   :  { %283 = shalt.err (!%p280_p4)
}
 0x1bd   :  { %s284_s6 = scalar_lea.hbm %s379_s7, 16 }
 0x1be   :  { %p285_p5 = scmp.ne.s32.totalorder %s379_s7, %s284_s6  ;;  %p288_p6 = scmp.lt.u32.totalorder %s284_s6, %s379_s7 }
 0x1c0   :  { %p290_p7 = pnand %p288_p6, %p285_p5 }
 0x1c2   :  { %293 = shalt.err (!%p290_p7)
}
 0x1c3   :  { %234 = dma.vmem_to_hbm [thread:$0]  %s232_s11, 16, %s379_s7, [#allocation4]  }
 0x1c4   :  { %294 = dma.done.wait [#allocation4], 16  }
 0x1c5   :  { %295 = vsyncadd [#allocation4], 4294967280 }
 0x1c6   :  { %238 = vsyncpa [#allocation4], 1 }

</bundles_post_ra>
